<compile_context>
chip_gen: v6e
topology: v6e:2x2x1
jax: 0.10.0
libtpu: 0.0.40
codegen_flags: <defaults>
</compile_context>

<pallas_src>
import functools

import jax
import jax.numpy as jnp
from jax.experimental import pallas as pl
from jax.experimental.pallas import tpu as pltpu


# ----------------------------------------------------------------------------
# helpers
# ----------------------------------------------------------------------------
def _round_up(x, m):
    return (x + m - 1) // m * m


def _apply_act(y, act):
    if act == "silu":
        # EUP reciprocal keeps the divide off the VALU slots.
        return y * pl.reciprocal(1.0 + jnp.exp(-y), approx=True)
    if act == "sigmoid":
        # exact sigmoid (used for the final classifier output only)
        return 1.0 / (1.0 + jnp.exp(-y))
    return y


# ----------------------------------------------------------------------------
# Pallas kernels
# ----------------------------------------------------------------------------
def _mm_kernel(a_ref, b_ref, shift_ref, o_ref, *, act):
    """(tm,K)@(K,N) bf16 -> f32 acc, fused shift + activation epilogue."""
    y = jnp.dot(a_ref[...], b_ref[...], preferred_element_type=jnp.float32)
    y = y + shift_ref[...]
    o_ref[...] = _apply_act(y, act).astype(o_ref.dtype)


def _dw_kernel(x_ref, w_ref, shift_ref, o_ref, mean_ref):
    """Depthwise conv as MAC over K*K taps + fused BN-shift + SiLU,
    with the SE global spatial mean fused in.
      x: (KK, B, HW, C) bf16   w: (KK, 1, 1, C) f32   shift: (1, 1, C) f32
      o: (B, HW, C) bf16       mean: (B, C) f32
    """
    kk = x_ref.shape[0]
    acc = x_ref[0] * w_ref[0]                         # bf16 * f32 -> f32
    for k in range(1, kk):
        acc = acc + x_ref[k] * w_ref[k]
    y = acc + shift_ref[...]
    y = y * pl.reciprocal(1.0 + jnp.exp(-y), approx=True)   # SiLU
    o_ref[...] = y.astype(o_ref.dtype)
    mean_ref[...] = jnp.mean(y, axis=1)


def _se_kernel(p_ref, w1_ref, b1_ref, w2_ref, b2_ref, o_ref):
    """Whole squeeze-excitation MLP in one kernel:
    silu(p @ w1 + b1) @ w2 + b2 -> sigmoid.  p:(B,Ce) f32, output bf16."""
    p = p_ref[...].astype(jnp.bfloat16)
    z = jnp.dot(p, w1_ref[...], preferred_element_type=jnp.float32) + b1_ref[...]
    z = z * pl.reciprocal(1.0 + jnp.exp(-z), approx=True)
    s = jnp.dot(z.astype(jnp.bfloat16), w2_ref[...],
                preferred_element_type=jnp.float32) + b2_ref[...]
    o_ref[...] = pl.reciprocal(1.0 + jnp.exp(-s), approx=True).astype(o_ref.dtype)


def _proj_kernel(h_ref, se_ref, w_ref, shift_ref, o_ref):
    """Projection 1x1 conv with SE rescale fused into the GEMM input."""
    a = (h_ref[0] * se_ref[0]).astype(jnp.bfloat16)          # (HW, Ce)
    y = jnp.dot(a, w_ref[...], preferred_element_type=jnp.float32) + shift_ref[...]
    o_ref[0] = y.astype(o_ref.dtype)


def _proj_res_kernel(h_ref, se_ref, w_ref, shift_ref, res_ref, o_ref):
    """Projection 1x1 conv with SE rescale AND residual add fused."""
    a = (h_ref[0] * se_ref[0]).astype(jnp.bfloat16)
    y = jnp.dot(a, w_ref[...], preferred_element_type=jnp.float32) + shift_ref[...]
    o_ref[0] = (y + res_ref[0].astype(jnp.float32)).astype(o_ref.dtype)


def _mean_kernel(x_ref, o_ref):
    """Global spatial mean: (B, HW, C) bf16 -> (B, C) f32."""
    o_ref[...] = jnp.mean(x_ref[...].astype(jnp.float32), axis=1)


_MM_KERNELS = {a: functools.partial(_mm_kernel, act=a)
               for a in ("none", "silu", "sigmoid")}


# ----------------------------------------------------------------------------
# pallas_call wrappers
# ----------------------------------------------------------------------------
@functools.partial(jax.jit, static_argnames=("act", "out_dtype"))
def _matmul_call(a, b, shift, act, out_dtype=jnp.bfloat16):
    a = a.astype(jnp.bfloat16)
    M, K = a.shape
    _, N = b.shape
    # whole M in one step; 2 parallel steps when M is large (v7x megacore)
    tm = M // 2 if (M >= 512 and M % 16 == 0) else M
    out = pl.pallas_call(
        _MM_KERNELS[act],
        out_shape=jax.ShapeDtypeStruct((M, N), out_dtype),
        grid=(M // tm,),
        in_specs=[
            pl.BlockSpec((tm, K), lambda i: (i, 0)),
            pl.BlockSpec((K, N), lambda i: (0, 0)),
            pl.BlockSpec((1, N), lambda i: (0, 0)),
        ],
        out_specs=pl.BlockSpec((tm, N), lambda i: (i, 0)),
        compiler_params=pltpu.CompilerParams(
            dimension_semantics=("parallel",)),
    )(a, b, shift.reshape(1, N))
    return out


@jax.jit
def _dw_call(stacked, w, shift):
    KK, B, HW, C = stacked.shape
    return pl.pallas_call(
        _dw_kernel,
        out_shape=(jax.ShapeDtypeStruct((B, HW, C), jnp.bfloat16),
                   jax.ShapeDtypeStruct((B, C), jnp.float32)),
    )(stacked, w, shift.reshape(1, 1, C))


@jax.jit
def _se_call(pooled, w1, b1, w2, b2):
    B, Ce = pooled.shape
    Sq = w1.shape[1]
    return pl.pallas_call(
        _se_kernel,
        out_shape=jax.ShapeDtypeStruct((B, Ce), jnp.bfloat16),
    )(pooled, w1, b1.reshape(1, Sq), w2, b2.reshape(1, Ce))


@jax.jit
def _proj_call(h, se, w, shift):
    B, HW, Ce = h.shape
    Cout = w.shape[1]
    return pl.pallas_call(
        _proj_kernel,
        out_shape=jax.ShapeDtypeStruct((B, HW, Cout), jnp.bfloat16),
        grid=(B,),
        in_specs=[
            pl.BlockSpec((1, HW, Ce), lambda b: (b, 0, 0)),
            pl.BlockSpec((1, 1, Ce), lambda b: (b, 0, 0)),
            pl.BlockSpec((Ce, Cout), lambda b: (0, 0)),
            pl.BlockSpec((1, Cout), lambda b: (0, 0)),
        ],
        out_specs=pl.BlockSpec((1, HW, Cout), lambda b: (b, 0, 0)),
        compiler_params=pltpu.CompilerParams(
            dimension_semantics=("parallel",)),
    )(h, se.reshape(B, 1, Ce), w, shift.reshape(1, Cout))


@jax.jit
def _proj_res_call(h, se, w, shift, res):
    B, HW, Ce = h.shape
    Cout = w.shape[1]
    return pl.pallas_call(
        _proj_res_kernel,
        out_shape=jax.ShapeDtypeStruct((B, HW, Cout), jnp.bfloat16),
        grid=(B,),
        in_specs=[
            pl.BlockSpec((1, HW, Ce), lambda b: (b, 0, 0)),
            pl.BlockSpec((1, 1, Ce), lambda b: (b, 0, 0)),
            pl.BlockSpec((Ce, Cout), lambda b: (0, 0)),
            pl.BlockSpec((1, Cout), lambda b: (0, 0)),
            pl.BlockSpec((1, HW, Cout), lambda b: (b, 0, 0)),
        ],
        out_specs=pl.BlockSpec((1, HW, Cout), lambda b: (b, 0, 0)),
        compiler_params=pltpu.CompilerParams(
            dimension_semantics=("parallel",)),
    )(h, se.reshape(B, 1, Ce), w, shift.reshape(1, Cout), res)


@jax.jit
def _mean_call(x):
    B, _, C = x.shape
    return pl.pallas_call(
        _mean_kernel,
        out_shape=jax.ShapeDtypeStruct((B, C), jnp.float32))(x)


# ----------------------------------------------------------------------------
# conv layers (im2col / tap-stacking is JAX glue; the MAC runs in Pallas)
# ----------------------------------------------------------------------------
def conv2d(x, w, shift, act, kernel, stride, padding):
    """General conv (used by the stem).  x:(B,H,W,Cin) bf16, w:(k*k*Cin,Cout)."""
    B, H, W, Cin = x.shape
    k, s, p = kernel, stride, padding
    Ho = (H + 2 * p - k) // s + 1
    Wo = (W + 2 * p - k) // s + 1
    if p:
        x = jnp.pad(x, ((0, 0), (p, p), (p, p), (0, 0)))
    cols = []
    for ki in range(k):
        for kj in range(k):
            cols.append(x[:, ki:ki + s * (Ho - 1) + 1:s,
                          kj:kj + s * (Wo - 1) + 1:s, :])
    a = jnp.concatenate(cols, axis=-1).reshape(B * Ho * Wo, k * k * Cin)
    out = _matmul_call(a, w, shift, act=act)
    return out.reshape(B, Ho, Wo, -1)


def depthwise_conv2d(x, w, shift, kernel, stride, padding):
    """x:(B,H,W,C) bf16, w:(k*k,1,1,C) f32.  Returns (h3, pooled, Ho, Wo)."""
    B, H, W, C = x.shape
    k, s, p = kernel, stride, padding
    Ho = (H + 2 * p - k) // s + 1
    Wo = (W + 2 * p - k) // s + 1
    xp = jnp.pad(x, ((0, 0), (p, p), (p, p), (0, 0)))
    taps = []
    for ki in range(k):
        for kj in range(k):
            taps.append(xp[:, ki:ki + s * (Ho - 1) + 1:s,
                           kj:kj + s * (Wo - 1) + 1:s, :].reshape(B, Ho * Wo, C))
    stacked = jnp.stack(taps, axis=0)                 # (KK, B, HW, C)
    h3, pooled = _dw_call(stacked, w, shift)
    return h3, pooled, Ho, Wo


# ----------------------------------------------------------------------------
# EfficientNet-B0 architecture (torchvision config), eval mode
# ----------------------------------------------------------------------------
# (expand_ratio, kernel, stride, in_ch, out_ch, num_layers)
B0_CFG = [
    (1, 3, 1, 32, 16, 1),
    (6, 3, 2, 16, 24, 2),
    (6, 5, 2, 24, 40, 2),
    (6, 3, 2, 40, 80, 3),
    (6, 5, 1, 80, 112, 3),
    (6, 5, 2, 112, 192, 4),
    (6, 3, 1, 192, 320, 1),
]


class KeyGen:
    def __init__(self, key):
        self.key = key

    def __call__(self):
        self.key, sub = jax.random.split(self.key)
        return sub


def _conv_w(kg, kh, kw, cin, cout):
    return jax.random.normal(kg(), (kh, kw, cin, cout), jnp.float32) * \
        float((kh * kw * cin) ** -0.5)


def _pad2(w, rp, cp):
    r, c = w.shape
    return jnp.pad(w, ((0, rp - r), (0, cp - c)))


def build_params(key):
    """Returns (cfgs, params). Channels are padded to multiples of 128 and BN
    scale (==1 in eval with fresh stats) is folded into the weights."""
    kg = KeyGen(key)
    params = {}
    # stem: Conv2d(1, 32, 3x3, s2, p1, bias=False) + BN + SiLU  (the new_proj)
    sw = _conv_w(kg, 3, 3, 1, 32).reshape(9, 32)
    params["stem"] = dict(w=_pad2(sw, 9, 128).astype(jnp.bfloat16),
                          shift=jnp.zeros(128, jnp.float32))
    cfgs, blocks = [], []
    for (t, k, s, cin, cout, n) in B0_CFG:
        for j in range(n):
            ci = cin if j == 0 else cout
            st = s if j == 0 else 1
            ce = ci * t
            sq = max(1, ci // 4)
            ci_p, ce_p, co_p, sq_p = (_round_up(c, 128) for c in (ci, ce, cout, sq))
            cfgs.append(dict(expand=(t != 1), kernel=k, stride=st,
                             use_res=(st == 1 and ci == cout)))
            blk = {}
            if t != 1:
                ew = _conv_w(kg, 1, 1, ci, ce).reshape(ci, ce)
                blk["expand_w"] = _pad2(ew, ci_p, ce_p).astype(jnp.bfloat16)
                blk["expand_shift"] = jnp.zeros(ce_p, jnp.float32)
            dw = jax.random.normal(kg(), (k, k, ce), jnp.float32) * \
                float((k * k) ** -0.5)
            dw = jnp.pad(dw.reshape(k * k, ce), ((0, 0), (0, ce_p - ce)))
            blk["dw_w"] = dw.reshape(k * k, 1, 1, ce_p)          # f32 taps
            blk["dw_shift"] = jnp.zeros(ce_p, jnp.float32)
            w1 = jax.random.normal(kg(), (ce, sq), jnp.float32) * float(ce ** -0.5)
            blk["se_w1"] = _pad2(w1, ce_p, sq_p).astype(jnp.bfloat16)
            blk["se_b1"] = jnp.zeros(sq_p, jnp.float32)
            w2 = jax.random.normal(kg(), (sq, ce), jnp.float32) * float(sq ** -0.5)
            blk["se_w2"] = _pad2(w2, sq_p, ce_p).astype(jnp.bfloat16)
            blk["se_b2"] = jnp.zeros(ce_p, jnp.float32)
            pw = _conv_w(kg, 1, 1, ce, cout).reshape(ce, cout)
            blk["proj_w"] = _pad2(pw, ce_p, co_p).astype(jnp.bfloat16)
            blk["proj_shift"] = jnp.zeros(co_p, jnp.float32)
            blocks.append(blk)
    params["blocks"] = blocks
    # head: Conv2d(320, 1280, 1x1) + BN + SiLU
    hw = _conv_w(kg, 1, 1, 320, 1280).reshape(320, 1280)
    params["head"] = dict(w=_pad2(hw, 384, 1280).astype(jnp.bfloat16),
                          shift=jnp.zeros(1280, jnp.float32))
    # MeanPooling.linear : Linear(1280 -> 1)
    # TODO(synk): MeanPooling also defines a LayerNorm that is never used in
    # its forward(); it is intentionally omitted.
    params["cls"] = dict(
        w=(jax.random.normal(kg(), (1280, 1), jnp.float32) *
           float(1280 ** -0.5)).astype(jnp.bfloat16),
        b=jnp.zeros(1, jnp.float32))
    return tuple(cfgs), params


def mbconv(x, cfg, p):
    B, H, W, Cin_p = x.shape
    k, s = cfg["kernel"], cfg["stride"]
    h = x
    if cfg["expand"]:
        Bn, Hh, Ww, Ci = h.shape
        h = _matmul_call(h.reshape(Bn * Hh * Ww, Ci),
                         p["expand_w"], p["expand_shift"], act="silu")
        h = h.reshape(Bn, Hh, Ww, -1)
    # depthwise conv (BN + SiLU) with the SE global mean fused in
    h3, pooled, Ho, Wo = depthwise_conv2d(h, p["dw_w"], p["dw_shift"],
                                          kernel=k, stride=s,
                                          padding=(k - 1) // 2)
    # squeeze-excitation MLP (one kernel)
    se = _se_call(pooled, p["se_w1"], p["se_b1"], p["se_w2"], p["se_b2"])
    # projection GEMM with fused SE rescale (+ residual when applicable);
    # stochastic depth is identity in eval mode
    if cfg["use_res"]:
        res = x.reshape(B, H * W, Cin_p)
        out = _proj_res_call(h3, se, p["proj_w"], p["proj_shift"], res)
    else:
        out = _proj_call(h3, se, p["proj_w"], p["proj_shift"])
    return out.reshape(B, Ho, Wo, -1)


def effnet_forward(cfgs, params, x):
    """x: (batch, time_steps, freq_bins) float32  ->  (batch, 1) in (0,1)."""
    # unsqueeze(1) + transpose(2,3): NCHW (B,1,freq,time) -> NHWC (B,freq,time,1)
    h = jnp.transpose(x, (0, 2, 1))[..., None].astype(jnp.bfloat16)
    p = params["stem"]
    h = conv2d(h, p["w"], p["shift"], "silu", kernel=3, stride=2, padding=1)
    for cfg, blk in zip(cfgs, params["blocks"]):
        h = mbconv(h, cfg, blk)
    # head 1x1 conv + BN + SiLU
    p = params["head"]
    B, Hh, Ww, C = h.shape
    h = _matmul_call(h.reshape(B * Hh * Ww, C), p["w"], p["shift"], act="silu")
    # MeanPooling: mean over both spatial dims, then Linear(1280 -> 1); sigmoid
    pooled = _mean_call(h.reshape(B, Hh * Ww, 1280))                 # (B, 1280)
    p = params["cls"]
    out = _matmul_call(pooled, p["w"], p["b"], act="sigmoid",
                       out_dtype=jnp.float32)                        # (B, 1)
    return out


if __name__ == "__main__":
    key = jax.random.PRNGKey(0)
    pkey, xkey = jax.random.split(key)
    cfgs, params = build_params(pkey)
    # (batch=2, time_steps=32, freq_bins=40): forward makes a (2,1,40,32) "image"
    x = jax.random.normal(xkey, (2, 32, 40), jnp.float32)
    fwd = jax.jit(functools.partial(effnet_forward, cfgs))
    out = jax.block_until_ready(fwd(params, x))
    assert out.shape == (2, 1), out.shape
    assert bool(jnp.all(jnp.isfinite(out)))
    assert bool(jnp.all((out > 0.0) & (out < 1.0)))
    print("KERNEL_OK")
</pallas_src>

<mosaic_0001>
module attributes {stable_mosaic.version = 11 : i64} {
  func.func @_mm_kernel(%arg0: i32, %arg1: memref<320x9xbf16, #tpu.memory_space<vmem>>, %arg2: memref<9x128xbf16, #tpu.memory_space<vmem>>, %arg3: memref<1x128xf32, #tpu.memory_space<vmem>>, %arg4: memref<320x128xbf16, #tpu.memory_space<vmem>>) attributes {dimension_semantics = [#tpu.dimension_semantics<parallel>], iteration_bounds = array<i64: 2>, scalar_prefetch = 0 : i64, scratch_operands = 0 : i64, tpu.core_type = #tpu.core_type<tc>, window_params = [{transform_indices = @transform_0, window_bounds = array<i64: 320, 9>}, {pipeline_mode = #tpu.pipeline_mode<synchronous>, transform_indices = @transform_1, window_bounds = array<i64: 9, 128>}, {pipeline_mode = #tpu.pipeline_mode<synchronous>, transform_indices = @transform_2, window_bounds = array<i64: 1, 128>}, {transform_indices = @transform_3, window_bounds = array<i64: 320, 128>}]} {
    %c0 = arith.constant 0 : index
    %c0_0 = arith.constant 0 : index
    %0 = vector.load %arg1[%c0, %c0_0] : memref<320x9xbf16, #tpu.memory_space<vmem>>, vector<320x9xbf16>
    %c0_1 = arith.constant 0 : index
    %c0_2 = arith.constant 0 : index
    %1 = vector.load %arg2[%c0_1, %c0_2] : memref<9x128xbf16, #tpu.memory_space<vmem>>, vector<9x128xbf16>
    %cst = arith.constant dense<0.000000e+00> : vector<320x128xf32>
    %2 = tpu.matmul %0, %1, %cst {dimension_numbers = #tpu.dot_dimension_numbers<[1], [0], [0], [1], [0, 0, 1, 1], [], []>} : vector<320x9xbf16>, vector<9x128xbf16>, vector<320x128xf32> -> vector<320x128xf32>
    %c0_3 = arith.constant 0 : index
    %c0_4 = arith.constant 0 : index
    %3 = vector.load %arg3[%c0_3, %c0_4] : memref<1x128xf32, #tpu.memory_space<vmem>>, vector<1x128xf32>
    %4 = vector.broadcast %3 : vector<1x128xf32> to vector<320x128xf32>
    %5 = arith.addf %2, %4 : vector<320x128xf32>
    %cst_5 = arith.constant 0.000000e+00 : f32
    %6 = vector.broadcast %cst_5 : f32 to vector<320x128xf32>
    %7 = arith.subf %6, %5 : vector<320x128xf32>
    %8 = math.exp %7 : vector<320x128xf32>
    %cst_6 = arith.constant 1.000000e+00 : f32
    %9 = vector.broadcast %cst_6 : f32 to vector<320x128xf32>
    %10 = arith.addf %9, %8 : vector<320x128xf32>
    %11 = tpu.reciprocal %10 {approx = true} : vector<320x128xf32> -> vector<320x128xf32>
    %12 = arith.mulf %5, %11 : vector<320x128xf32>
    %13 = arith.truncf %12 : vector<320x128xf32> to vector<320x128xbf16>
    %c0_7 = arith.constant 0 : index
    %c0_8 = arith.constant 0 : index
    %14 = vector.load %arg4[%c0_7, %c0_8] : memref<320x128xbf16, #tpu.memory_space<vmem>>, vector<320x128xbf16>
    tpu.vector_store %arg4[%c0_7, %c0_8], %13 {strides = array<i32>} : memref<320x128xbf16, #tpu.memory_space<vmem>>, vector<320x128xbf16>,
    return
  }
  func.func @transform_0(%arg0: i32) -> (i32, i32) {
    %c0_i32 = arith.constant 0 : i32
    %c0_i32_0 = arith.constant 0 : i32
    return %arg0, %c0_i32 : i32, i32
  }
  func.func @transform_1(%arg0: i32) -> (i32, i32) {
    %c0_i32 = arith.constant 0 : i32
    %c0_i32_0 = arith.constant 0 : i32
    %c0_i32_1 = arith.constant 0 : i32
    return %c0_i32, %c0_i32_0 : i32, i32
  }
  func.func @transform_2(%arg0: i32) -> (i32, i32) {
    %c0_i32 = arith.constant 0 : i32
    %c0_i32_0 = arith.constant 0 : i32
    %c0_i32_1 = arith.constant 0 : i32
    return %c0_i32, %c0_i32_0 : i32, i32
  }
  func.func @transform_3(%arg0: i32) -> (i32, i32) {
    %c0_i32 = arith.constant 0 : i32
    %c0_i32_0 = arith.constant 0 : i32
    return %arg0, %c0_i32 : i32, i32
  }
}

</mosaic_0001>

<bundles_post_ra>
// kernel: _matmul_call.1
= control target key start
LH: loop header
LB: loop body
LE: loop exit
PB: predicated region body
PF: predicated region fallthrough
CT: control target
= control target key end

     0   :  { %8 = vsyncpa [#allocation3], 0  ;;  %s2116_s0 = inlined_call_operand.vmem [shape: bf16[640,9], index: 0, kind: input, shape index: {}]   ;;  %s2117_s1 = inlined_call_operand.vmem [shape: bf16[9,128], index: 1, kind: input, shape index: {}]   ;;  %s2118_s2 = inlined_call_operand.vmem [shape: f32[1,128], index: 2, kind: input, shape index: {}]   ;;  %s2119_s3 = inlined_call_operand.hbm [shape: bf16[640,128], index: 3, kind: output, shape index: {}]  }
   0x1   :  { %10 = vsyncpa [#allocation3 + $0x1], 0  ;;  %s1729_s12 = smov 0   ;;  %s1731_s13 = smov 0  }
   0x2   :  { %s1733_s14 = smov 0   ;;  %s1735_s15 = smov 0  }
   0x3 LB: > { %s1750_s16 = sadd.s32 4294967295, %s1703_s15   ;;  %s1104_s17 = sadd.s32 4294967294, %s1703_s15   ;;  %s1703_s15 = sphi %s1735_s15, %s2125_s15   ;;  %s1699_s14 = sphi %s1733_s14, %s2124_s14   ;;  %s1695_s13 = sphi %s1731_s13, %s2123_s13   ;;  %s1691_s12 = sphi %s1729_s12, %s2122_s12  }
   0x4   : > { %s1754_s18 = sadd.s32 1, %s1703_s15   ;;  %s91_s19 = sadd.s32 1, %s1699_s14 }
   0x5   : > { %s88_s20 = ssub.s32 %s1703_s15, %s1754_s18  ;;  %p101_p0 = scmp.ne.s32.totalorder %s1699_s14, %s1695_s13 }
   0x6   : > { %p89_p1 = scmp.eq.s32.totalorder %s88_s20, 0  ;;  %p102_p2 = scmp.eq.s32.totalorder %s1750_s16, 1 }
   0x7   : > { %p107_p3 = scmp.ne.s32.totalorder %s1695_s13, %s1691_s12  ;;  %p108_p4 = scmp.eq.s32.totalorder %s1104_s17, 1 }
   0x8   : > { %s1765_s21 = scalar_select %p89_p1, %s1699_s14, %s91_s19  }
   0x9   : > { %p1767_p5 = por %p102_p2, %p101_p0  ;;  %p1771_p6 = por %p108_p4, %p107_p3 }
   0xa   : > { %p1107_p7 = scmp.ge.s32.totalorder %s1703_s15, 1  ;;  %p141_p8 = scmp.lt.s32.totalorder %s1703_s15, 3 }
   0xc   : > { %p142_p9 = pnand %p1107_p7, %p141_p8 }
   0xd   : > { %s165_s26 = smul.u32 (!%p142_p9), 40, %s1750_s16  ;;  %s162_s6 = sand.u32 (!%p142_p9), 1, %s1695_s13  }
   0xe   : > { %145 = sbr.rel (%p142_p9) target bundleno = 346 (0x15a), region = 32  ;;  %s2076_s19 = scalar_lea.sflag (!%p142_p9), [#allocation3], %s162_s6 }
   0xf   : > { %p166_p10 = scmp.lt.s32.totalorder (!%p142_p9), %s165_s26, 79  ;;  %s1951_s7 = smul.u32 (!%p142_p9), 160, %s162_s6 }
  0x10   : > { %s1234_s9 = smul.u32 (!%p142_p9), 2560, %s1750_s16  ;;  %s1706_s24 = smov (!%p142_p9), [#allocation2]  }
  0x11   : > { %s1977_s8 = scalar_lea.vmem (!%p142_p9), [#allocation2], %s1951_s7  ;;  %s1647_s25 = sshll.u32 (!%p142_p9), %s1706_s24, 4  ;;  %s1648_s25 = int_to_ptr.vmem [resolvable:$false] %s1647_s25 }
  0x12   : > { %s1042_s10 = sshll.u32 (!%p142_p9), %s1977_s8, 4  ;;  %s2067_s17 = scalar_lea.hbm (!%p142_p9), %s2119_s3, %s1234_s9  ;;  %s2069_s10 = int_to_ptr.vmem [resolvable:$true] %s1042_s10 }
  0x13   : > { %v1462_v0 = vld [vmem:[%s2117_s1] sm:$0x1f]   ;;  %vm388_vm0 = vcmask 1043456   ;;  %vm389_vm1 = vcmask 1044480   ;;  %v1705_v1 = vmov 65535   ;;  %s2127_s26 = smov (!%p166_p10, %s165_s26), 79  ;;  %p1650_p0 = scmp.lt.s32.totalorder %s2069_s10, %s1648_s25 }
  0x14   : > { %v390_v2 = vsel %vm388_vm0, 4294967295, %v1705_v1  ;;  %s1108_s27 = sshll.u32 %s2127_s26, 2  ;;  %vm327_vm2 = vcmask 72704   ;;  %v1829_v25 = vld [vmem:[%s2118_s2] ss:$0 sm:$0xff]  ;;  %s1643_s20 = scalar_lea.vmem %s2069_s10, 2560 }
  0x15   : > { %v391_v3 = vsel %vm389_vm1, %v390_v2, 0  ;;  %s1784_s30 = scalar_lea.vmem %s2116_s0, %s1108_s27  ;;  %p1644_p11 = scmp.ne.s32.totalorder %s2069_s10, %s1643_s20 }
  0x16   : > { %v393_v4 = vand.u32 %v1462_v0, %v391_v3  ;;  %v1463_v5 = vld [vmem:[%s1784_s30] sm:$0xff]   ;;  %v1464_v6 = vld [vmem:[%s1784_s30 + $0x50] sm:$0xff]   ;;  %v1465_v7 = vld [vmem:[%s1784_s30 + $0x8] sm:$0xff]   ;;  %s1649_s26 = scalar_lea.vmem %s1648_s25, 5120 }
  0x17   : > { %1377 = vmatprep.mubr.msk.bf16.mxu0 %vm327_vm2, %v1463_v5  ;;  %1397 = vmatprep.mubr.msk.bf16.mxu1 %vm327_vm2, %v1464_v6  ;;  %v1466_v8 = vld [vmem:[%s1784_s30 + $0x58] sm:$0xff]   ;;  %v1467_v9 = vld [vmem:[%s1784_s30 + $0x10] sm:$0xff]   ;;  %v1468_v10 = vld [vmem:[%s1784_s30 + $0x60] sm:$0xff]   ;;  %p1645_p12 = pnand %p1644_p11, %p1767_p5  ;;  %p1651_p1 = scmp.lt.s32.totalorder %s1649_s26, %s1643_s20 }
  0x18   : > { %1375 = vmatprep.subr.bf16.mxu0 %v393_v4  ;;  %1417 = vmatprep.subr.bf16.mxu1 %v393_v4  ;;  %v1469_v11 = vld [vmem:[%s1784_s30 + $0x18] sm:$0xff]   ;;  %v1470_v12 = vld [vmem:[%s1784_s30 + $0x68] sm:$0xff]   ;;  %v1471_v13 = vld [vmem:[%s1784_s30 + $0x20] sm:$0xff]  }
  0x19   : > { %1376 = vmatpush3.bf16.msra.mxu0 %v393_v4  ;;  %1418 = vmatpush3.bf16.msra.mxu1 %v393_v4  ;;  %v1472_v14 = vld [vmem:[%s1784_s30 + $0x70] sm:$0xff]   ;;  %v1473_v15 = vld [vmem:[%s1784_s30 + $0x28] sm:$0xff]   ;;  %v1474_v16 = vld [vmem:[%s1784_s30 + $0x78] sm:$0xff]   ;;  %p1646_p13 = pneg %p1645_p12  ;;  %p1652_p2 = por %p1651_p1, %p1650_p0 }
  0x1a   : > { %v1475_v17 = vld [vmem:[%s1784_s30 + $0x30] sm:$0xff]   ;;  %v1476_v18 = vld [vmem:[%s1784_s30 + $0x80] sm:$0xff]   ;;  %v1477_v19 = vld [vmem:[%s1784_s30 + $0x38] sm:$0xff]  }
  0x1b   : > { %v1478_v20 = vld [vmem:[%s1784_s30 + $0x88] sm:$0xff]   ;;  %v1479_v21 = vld [vmem:[%s1784_s30 + $0x40] sm:$0xff]   ;;  %v1480_v22 = vld [vmem:[%s1784_s30 + $0x90] sm:$0xff]   ;;  %p1653_p3 = pnand %p1652_p2, %p1646_p13 }
  0x1c   : > { %1378 = vmatmul.mubr.msk.bf16.vlgmr.msra.gmra.mxu0 %vm327_vm2, %v1465_v7  ;;  %1398 = vmatmul.mubr.msk.bf16.vlgmr.msra.gmra.mxu1 %vm327_vm2, %v1466_v8  ;;  %v1481_v23 = vld [vmem:[%s1784_s30 + $0x48] sm:$0xff]   ;;  %v1482_v24 = vld [vmem:[%s1784_s30 + $0x98] sm:$0xff]  }
  0x1d   : > { %1381 = vmatprep.mubr.msk.bf16.mxu0 %vm327_vm2, %v1467_v9  ;;  %1401 = vmatprep.mubr.msk.bf16.mxu1 %vm327_vm2, %v1468_v10 }
  0x24   : > { %1382 = vmatmul.mubr.msk.bf16.gmra.mxu0 %vm327_vm2, %v1469_v11  ;;  %1402 = vmatmul.mubr.msk.bf16.gmra.mxu1 %vm327_vm2, %v1470_v12 }
  0x25   : > { %1385 = vmatprep.mubr.msk.bf16.mxu0 %vm327_vm2, %v1471_v13  ;;  %1405 = vmatprep.mubr.msk.bf16.mxu1 %vm327_vm2, %v1472_v14 }
  0x2c   : > { %1386 = vmatmul.mubr.msk.bf16.gmra.mxu0 %vm327_vm2, %v1473_v15  ;;  %1406 = vmatmul.mubr.msk.bf16.gmra.mxu1 %vm327_vm2, %v1474_v16 }
  0x2d   : > { %1389 = vmatprep.mubr.msk.bf16.mxu0 %vm327_vm2, %v1475_v17  ;;  %1409 = vmatprep.mubr.msk.bf16.mxu1 %vm327_vm2, %v1476_v18 }
  0x34   : > { %1390 = vmatmul.mubr.msk.bf16.gmra.mxu0 %vm327_vm2, %v1477_v19  ;;  %1410 = vmatmul.mubr.msk.bf16.gmra.mxu1 %vm327_vm2, %v1478_v20 }
  0x35   : > { %1393 = vmatprep.mubr.msk.bf16.mxu0 %vm327_vm2, %v1479_v21  ;;  %1413 = vmatprep.mubr.msk.bf16.mxu1 %vm327_vm2, %v1480_v22 }
  0x3c   : > { %1394 = vmatmul.mubr.msk.bf16.gmra.mxu0 %vm327_vm2, %v1481_v23  ;;  %1414 = vmatmul.mubr.msk.bf16.gmra.mxu1 %vm327_vm2, %v1482_v24 }
  0xdc   : > { %v1379_v26 = vpop.f32.mrf.mxu0  ;;  %v1399_v28 = vpop.f32.mrf.mxu1 }
  0xdd   : > { %v1832_v27 = vadd.f32 %v1379_v26, %v1829_v25  ;;  %v1835_v29 = vadd.f32 %v1399_v28, %v1829_v25 }
  0xde   : > { %v429_v30 = vpop.f32.mrf.mxu0  ;;  %v509_v33 = vpop.f32.mrf.mxu1 }
  0xdf   : > { %v590_v31 = vsub.f32 0.0, %v1832_v27  ;;  %v1839_v32 = vadd.f32 %v1829_v25, %v429_v30  ;;  %v610_v34 = vsub.f32 0.0, %v1835_v29  ;;  %v1843_v35 = vadd.f32 %v1829_v25, %v509_v33 }
  0xe0   : > { %v1380_v36 = vpop.f32.mrf.mxu0  ;;  %v1400_v40 = vpop.f32.mrf.mxu1 }
  0xe1   : > { %v632_v37 = vmul.f32 1.442695, %v590_v31  ;;  %v588_v38 = vsub.f32 0.0, %v1839_v32  ;;  %v1847_v39 = vadd.f32 %v1380_v36, %v1829_v25  ;;  %v672_v41 = vmul.f32 1.442695, %v610_v34 }
  0xe2   : > { %v608_v42 = vsub.f32 0.0, %v1843_v35  ;;  %v1851_v43 = vadd.f32 %v1400_v40, %v1829_v25  ;;  %v432_v44 = vpop.f32.mrf.mxu0  ;;  %v512_v48 = vpop.f32.mrf.mxu1 }
  0xe3   : > { %1483 = vpow2.f32 %v632_v37  ;;  %v628_v45 = vmul.f32 1.442695, %v588_v38  ;;  %v591_v46 = vsub.f32 0.0, %v1847_v39  ;;  %v1855_v47 = vadd.f32 %v1829_v25, %v432_v44 }
  0xe4   : > { %1485 = vpow2.f32 %v672_v41  ;;  %v668_v49 = vmul.f32 1.442695, %v608_v42  ;;  %v611_v50 = vsub.f32 0.0, %v1851_v43  ;;  %v1859_v51 = vadd.f32 %v1829_v25, %v512_v48  ;;  %v1383_v52 = vpop.f32.mrf.mxu0  ;;  %v1403_v56 = vpop.f32.mrf.mxu1 }
  0xe5   : > { %1487 = vpow2.f32 %v628_v45  ;;  %v634_v53 = vmul.f32 1.442695, %v591_v46  ;;  %v589_v54 = vsub.f32 0.0, %v1855_v47  ;;  %v1863_v55 = vadd.f32 %v1383_v52, %v1829_v25 }
  0xe6   : > { %1489 = vpow2.f32 %v668_v49  ;;  %v674_v57 = vmul.f32 1.442695, %v611_v50  ;;  %v609_v58 = vsub.f32 0.0, %v1859_v51  ;;  %v1867_v59 = vadd.f32 %v1403_v56, %v1829_v25  ;;  %v445_v60 = vpop.f32.mrf.mxu0  ;;  %v525_v0 = vpop.f32.mrf.mxu1 }
  0xe7   : > { %1491 = vpow2.f32 %v634_v53  ;;  %v630_v61 = vmul.f32 1.442695, %v589_v54  ;;  %v594_v62 = vsub.f32 0.0, %v1863_v55  ;;  %v1871_v63 = vadd.f32 %v1829_v25, %v445_v60 }
  0xe8   : > { %1493 = vpow2.f32 %v674_v57  ;;  %v670_v1 = vmul.f32 1.442695, %v609_v58  ;;  %v614_v2 = vsub.f32 0.0, %v1867_v59  ;;  %v1875_v3 = vadd.f32 %v1829_v25, %v525_v0  ;;  %v1384_v4 = vpop.f32.mrf.mxu0  ;;  %v1404_v8 = vpop.f32.mrf.mxu1 }
  0xe9   : > { %1495 = vpow2.f32 %v630_v61  ;;  %v640_v5 = vmul.f32 1.442695, %v594_v62  ;;  %v592_v6 = vsub.f32 0.0, %v1871_v63  ;;  %v1879_v7 = vadd.f32 %v1384_v4, %v1829_v25 }
  0xea   : > { %1497 = vpow2.f32 %v670_v1  ;;  %v680_v9 = vmul.f32 1.442695, %v614_v2  ;;  %v612_v10 = vsub.f32 0.0, %v1875_v3  ;;  %v1883_v11 = vadd.f32 %v1404_v8, %v1829_v25  ;;  %v448_v12 = vpop.f32.mrf.mxu0  ;;  %v528_v16 = vpop.f32.mrf.mxu1 }
  0xeb   : > { %1499 = vpow2.f32 %v640_v5  ;;  %v636_v13 = vmul.f32 1.442695, %v592_v6  ;;  %v595_v14 = vsub.f32 0.0, %v1879_v7  ;;  %v1887_v15 = vadd.f32 %v1829_v25, %v448_v12 }
  0xec   : > { %1501 = vpow2.f32 %v680_v9  ;;  %v676_v17 = vmul.f32 1.442695, %v612_v10  ;;  %v615_v18 = vsub.f32 0.0, %v1883_v11  ;;  %v1891_v19 = vadd.f32 %v1829_v25, %v528_v16  ;;  %v1387_v20 = vpop.f32.mrf.mxu0  ;;  %v1407_v23 = vpop.f32.mrf.mxu1 }
  0xed   : > { %1503 = vpow2.f32 %v636_v13  ;;  %v642_v21 = vmul.f32 1.442695, %v595_v14  ;;  %v593_v22 = vsub.f32 0.0, %v1887_v15  ;;  %v1896_v31 = vadd.f32 %v1387_v20, %v1829_v25 }
  0xee   : > { %1505 = vpow2.f32 %v676_v17  ;;  %v682_v24 = vmul.f32 1.442695, %v615_v18  ;;  %v613_v26 = vsub.f32 0.0, %v1891_v19  ;;  %v461_v28 = vpop.f32.mrf.mxu0  ;;  %v541_v33 = vpop.f32.mrf.mxu1  ;;  %v1899_v37 = vadd.f32 %v1407_v23, %v1829_v25 }
  0xef   : > { %1507 = vpow2.f32 %v642_v21  ;;  %v638_v30 = vmul.f32 1.442695, %v593_v22  ;;  %v598_v50 = vsub.f32 0.0, %v1896_v31  ;;  %v1903_v52 = vadd.f32 %v1829_v25, %v461_v28 }
  0xf0   : > { %v1484_v34 = vpop.eup %1483  ;;  %1509 = vpow2.f32 %v682_v24  ;;  %v678_v36 = vmul.f32 1.442695, %v613_v26  ;;  %v1388_v38 = vpop.f32.mrf.mxu0  ;;  %v618_v57 = vsub.f32 0.0, %v1899_v37  ;;  %v1907_v1 = vadd.f32 %v1829_v25, %v541_v33 }
  0xf1   : > { %v1486_v40 = vpop.eup %1485  ;;  %v710_v41 = vadd.f32 1.0, %v1484_v34  ;;  %1511 = vpow2.f32 %v638_v30  ;;  %v1408_v42 = vpop.f32.mrf.mxu1  ;;  %v1909_v5 = vmul.f32 1.442695, %v598_v50  ;;  %v596_v6 = vsub.f32 0.0, %v1903_v52 }
  0xf2   : > { %v1488_v44 = vpop.eup %1487  ;;  %v730_v45 = vadd.f32 1.0, %v1486_v40  ;;  %1513 = vpow2.f32 %v678_v36  ;;  %v464_v46 = vpop.f32.mrf.mxu0  ;;  %v1912_v12 = vmul.f32 1.442695, %v618_v57  ;;  %v1915_v13 = vadd.f32 %v1388_v38, %v1829_v25 }
  0xf3   : > { %v1490_v48 = vpop.eup %1489  ;;  %1515 = vrcp.f32 %v710_v41  ;;  %v708_v49 = vadd.f32 1.0, %v1488_v44  ;;  %v544_v53 = vpop.f32.mrf.mxu1  ;;  %v1918_v17 = vadd.f32 %v1408_v42, %v1829_v25  ;;  %v1921_v18 = vadd.f32 %v1829_v25, %v464_v46 }
  0xf4   : > { %v1492_v54 = vpop.eup %1491  ;;  %1517 = vrcp.f32 %v730_v45  ;;  %v728_v56 = vadd.f32 1.0, %v1490_v48  ;;  %v1391_v61 = vpop.f32.mrf.mxu0  ;;  %v1924_v23 = vadd.f32 %v1829_v25, %v544_v53  ;;  %v616_v30 = vsub.f32 0.0, %v1907_v1 }
  0xf5   : > { %v1494_v58 = vpop.eup %1493  ;;  %1519 = vrcp.f32 %v708_v49  ;;  %v711_v60 = vadd.f32 1.0, %v1492_v54  ;;  %v1411_v8 = vpop.f32.mrf.mxu1  ;;  %v1927_v24 = vadd.f32 %v1391_v61, %v1829_v25  ;;  %v644_v40 = vmul.f32 1.442695, %v596_v6 }
  0xf6   : > { %v1496_v62 = vpop.eup %1495  ;;  %1521 = vrcp.f32 %v728_v56  ;;  %v731_v0 = vadd.f32 1.0, %v1494_v58  ;;  %v477_v20 = vpop.f32.mrf.mxu0  ;;  %v1931_v33 = vadd.f32 %v1411_v8, %v1829_v25  ;;  %v599_v41 = vsub.f32 0.0, %v1915_v13 }
  0xf7   : > { %v1498_v2 = vpop.eup %1497  ;;  %1523 = vrcp.f32 %v711_v60  ;;  %v709_v4 = vadd.f32 1.0, %v1496_v62  ;;  %v557_v34 = vpop.f32.mrf.mxu1  ;;  %v619_v45 = vsub.f32 0.0, %v1918_v17  ;;  %v597_v46 = vsub.f32 0.0, %v1921_v18 }
  0xf8   : > { %v1500_v9 = vpop.eup %1499  ;;  %1525 = vrcp.f32 %v731_v0  ;;  %v729_v10 = vadd.f32 1.0, %v1498_v2  ;;  %v1392_v48 = vpop.f32.mrf.mxu0  ;;  %v617_v53 = vsub.f32 0.0, %v1924_v23  ;;  %v602_v54 = vsub.f32 0.0, %v1927_v24 }
  0xf9   : > { %v1502_v14 = vpop.eup %1501  ;;  %1527 = vrcp.f32 %v709_v4  ;;  %v714_v16 = vadd.f32 1.0, %v1500_v9  ;;  %v622_v58 = vsub.f32 0.0, %v1931_v33  ;;  %v1941_v60 = vadd.f32 %v1829_v25, %v477_v20  ;;  %v1412_v61 = vpop.f32.mrf.mxu1 }
  0xfa   : > { %v1504_v21 = vpop.eup %1503  ;;  %1529 = vrcp.f32 %v729_v10  ;;  %v734_v22 = vadd.f32 1.0, %v1502_v14  ;;  %v1944_v2 = vadd.f32 %v1829_v25, %v557_v34  ;;  %v1947_v4 = vadd.f32 %v1392_v48, %v1829_v25 }
  0xfb   : > { %v1506_v26 = vpop.eup %1505  ;;  %1531 = vrcp.f32 %v714_v16  ;;  %v712_v28 = vadd.f32 1.0, %v1504_v21  ;;  %v684_v8 = vmul.f32 1.442695, %v616_v30  ;;  %v650_v9 = vmul.f32 1.442695, %v599_v41 }
  0xfc   : > { %v1508_v36 = vpop.eup %1507  ;;  %1533 = vrcp.f32 %v734_v22  ;;  %v732_v38 = vadd.f32 1.0, %v1506_v26  ;;  %v690_v10 = vmul.f32 1.442695, %v619_v45  ;;  %v646_v16 = vmul.f32 1.442695, %v597_v46  ;;  %v480_v22 = vpop.f32.mrf.mxu0 }
  0xfd   : > { %v1510_v42 = vpop.eup %1509  ;;  %1535 = vrcp.f32 %v712_v28  ;;  %v715_v44 = vadd.f32 1.0, %v1508_v36  ;;  %v686_v20 = vmul.f32 1.442695, %v617_v53  ;;  %v1954_v21 = vadd.f32 %v1412_v61, %v1829_v25  ;;  %v560_v36 = vpop.f32.mrf.mxu1 }
  0xfe   : > { %v1512_v49 = vpop.eup %1511  ;;  %1537 = vrcp.f32 %v732_v38  ;;  %v735_v50 = vadd.f32 1.0, %v1510_v42  ;;  %v656_v28 = vmul.f32 1.442695, %v602_v54  ;;  %v696_v34 = vmul.f32 1.442695, %v622_v58 }
  0xff   : > { %v1514_v56 = vpop.eup %1513  ;;  %1539 = vrcp.f32 %v715_v44  ;;  %v713_v57 = vadd.f32 1.0, %v1512_v49  ;;  %v600_v30 = vsub.f32 0.0, %v1941_v60  ;;  %v620_v42 = vsub.f32 0.0, %v1944_v2 }
 0x100   : > { %v1516_v62 = vpop.eup %1515  ;;  %1541 = vrcp.f32 %v735_v50  ;;  %v733_v0 = vadd.f32 1.0, %v1514_v56  ;;  %v603_v44 = vsub.f32 0.0, %v1947_v4 }
 0x101   : > { %v1518_v6 = vpop.eup %1517  ;;  %1543 = vrcp.f32 %v713_v57  ;;  %v790_v41 = vmul.f32 %v1516_v62, %v1832_v27  ;;  %v623_v27 = vsub.f32 0.0, %v1954_v21  ;;  %v652_v61 = vmul.f32 1.442695, %v600_v30 }
 0x102   : > { %v1520_v14 = vpop.eup %1519  ;;  %1545 = vrcp.f32 %v733_v0  ;;  %v810_v46 = vmul.f32 %v1518_v6, %v1835_v29  ;;  %v692_v0 = vmul.f32 1.442695, %v620_v42 }
 0x103   : > { %v1522_v26 = vpop.eup %1521  ;;  %1547 = vpow2.f32 %v1909_v5  ;;  %v1965_v5 = vadd.f32 %v1829_v25, %v480_v22  ;;  %v788_v54 = vmul.f32 %v1520_v14, %v1839_v32 }
 0x104   : > { %v1524_v38 = vpop.eup %1523  ;;  %1549 = vpow2.f32 %v1912_v12  ;;  %v1970_v12 = vadd.f32 %v1829_v25, %v560_v36  ;;  %v808_v56 = vmul.f32 %v1522_v26, %v1843_v35 }
 0x105   : > { %v1526_v45 = vpop.eup %1525  ;;  %v791_v48 = vmul.f32 %v1524_v38, %v1847_v39  ;;  %1551 = vpow2.f32 %v644_v40  ;;  %v1395_v38 = vpop.f32.mrf.mxu0 }
 0x106   : > { %v1528_v49 = vpop.eup %1527  ;;  %v811_v50 = vmul.f32 %v1526_v45, %v1851_v43  ;;  %1553 = vpow2.f32 %v684_v8  ;;  %v658_v8 = vmul.f32 1.442695, %v603_v44 }
 0x107   : > { %v1530_v53 = vpop.eup %1529  ;;  %v1243_v29 = vpack.c.bf16 %v791_v48, %v790_v41  ;;  %v789_v39 = vmul.f32 %v1528_v49, %v1855_v47  ;;  %1555 = vpow2.f32 %v650_v9  ;;  %v601_v47 = vsub.f32 0.0, %v1965_v5 }
 0x108   : > { %v1532_v40 = vpop.eup %1531  ;;  %v1293_v57 = vpack.c.bf16 %v811_v50, %v810_v46  ;;  %v809_v58 = vmul.f32 %v1530_v53, %v1859_v51  ;;  %1557 = vpow2.f32 %v690_v10  ;;  %v621_v51 = vsub.f32 0.0, %v1970_v12 }
 0x109   : > { %v1534_v43 = vpop.eup %1533  ;;  %1335 = vst [vmem:[%s1977_s8 + $0x8] sm:$0xff] %v1243_v29   ;;  %v1238_v32 = vpack.c.bf16 %v789_v39, %v788_v54  ;;  %1559 = vpow2.f32 %v646_v16  ;;  %v698_v10 = vmul.f32 1.442695, %v623_v27  ;;  %v794_v16 = vmul.f32 %v1532_v40, %v1863_v55  ;;  %v493_v27 = vpop.f32.mrf.mxu0 }
 0x10a   : > { %v1536_v62 = vpop.eup %1535  ;;  %1345 = vst [vmem:[%s1977_s8 + $0x58] sm:$0xff] %v1293_v57   ;;  %v1288_v35 = vpack.c.bf16 %v809_v58, %v808_v56  ;;  %1561 = vpow2.f32 %v686_v20  ;;  %v654_v26 = vmul.f32 1.442695, %v601_v47  ;;  %v814_v20 = vmul.f32 %v1534_v43, %v1867_v59 }
 0x10b   : > { %v1538_v6 = vpop.eup %1537  ;;  %1239 = vst [vmem:[%s1977_s8] sm:$0xff] %v1238_v32   ;;  %1563 = vpow2.f32 %v656_v28  ;;  %v694_v28 = vmul.f32 1.442695, %v621_v51  ;;  %v1396_v58 = vpop.f32.mrf.mxu0 }
 0x10c   : > { %v1540_v9 = vpop.eup %1539  ;;  %1344 = vst [vmem:[%s1977_s8 + $0x50] sm:$0xff] %v1288_v35   ;;  %1565 = vpow2.f32 %v696_v34  ;;  %v792_v34 = vmul.f32 %v1536_v62, %v1871_v63  ;;  %v812_v45 = vmul.f32 %v1538_v6, %v1875_v3 }
 0x10d   : > { %v1542_v14 = vpop.eup %1541  ;;  %v795_v22 = vmul.f32 %v1540_v9, %v1879_v7  ;;  %1567 = vpow2.f32 %v652_v61  ;;  %v1415_v7 = vpop.f32.mrf.mxu1  ;;  %v1998_v61 = vadd.f32 %v1395_v38, %v1829_v25 }
 0x10e   : > { %v1544_v30 = vpop.eup %1543  ;;  %v815_v36 = vmul.f32 %v1542_v14, %v1883_v11  ;;  %1569 = vpow2.f32 %v692_v0  ;;  %v2001_v0 = vadd.f32 %v1415_v7, %v1829_v25 }
 0x10f   : > { %v1546_v41 = vpop.eup %1545  ;;  %v1253_v42 = vpack.c.bf16 %v795_v22, %v794_v16  ;;  %v793_v55 = vmul.f32 %v1544_v30, %v1887_v15  ;;  %1571 = vpow2.f32 %v658_v8  ;;  %v573_v54 = vpop.f32.mrf.mxu1  ;;  %v2004_v8 = vadd.f32 %v1829_v25, %v493_v27 }
 0x110   : > { %v1548_v44 = vpop.eup %1547  ;;  %v1303_v59 = vpack.c.bf16 %v815_v36, %v814_v20  ;;  %v813_v11 = vmul.f32 %v1546_v41, %v1891_v19  ;;  %1573 = vpow2.f32 %v698_v10  ;;  %v2007_v14 = vadd.f32 %v1829_v25, %v573_v54  ;;  %v496_v16 = vpop.f32.mrf.mxu0 }
 0x111   : > { %v1550_v46 = vpop.eup %1549  ;;  %1337 = vst [vmem:[%s1977_s8 + $0x18] sm:$0xff] %v1253_v42   ;;  %v1248_v48 = vpack.c.bf16 %v793_v55, %v792_v34  ;;  %v718_v49 = vadd.f32 1.0, %v1548_v44  ;;  %1575 = vpow2.f32 %v654_v26  ;;  %v1416_v47 = vpop.f32.mrf.mxu1  ;;  %v606_v30 = vsub.f32 0.0, %v1998_v61 }
 0x112   : > { %v1552_v63 = vpop.eup %1551  ;;  %1347 = vst [vmem:[%s1977_s8 + $0x68] sm:$0xff] %v1303_v59   ;;  %v1298_v50 = vpack.c.bf16 %v813_v11, %v812_v45  ;;  %v738_v15 = vadd.f32 1.0, %v1550_v46  ;;  %1577 = vpow2.f32 %v694_v28  ;;  %v2011_v20 = vadd.f32 %v1396_v58, %v1829_v25 }
 0x113   : > { %v1554_v53 = vpop.eup %1553  ;;  %1336 = vst [vmem:[%s1977_s8 + $0x10] sm:$0xff] %v1248_v48   ;;  %1579 = vrcp.f32 %v718_v49  ;;  %v716_v3 = vadd.f32 1.0, %v1552_v63  ;;  %v576_v36 = vpop.f32.mrf.mxu1  ;;  %v626_v41 = vsub.f32 0.0, %v2001_v0  ;;  %v2015_v34 = vadd.f32 %v1416_v47, %v1829_v25 }
 0x114   : > { %v1556_v29 = vpop.eup %1555  ;;  %1346 = vst [vmem:[%s1977_s8 + $0x60] sm:$0xff] %v1298_v50   ;;  %1581 = vrcp.f32 %v738_v15  ;;  %v736_v19 = vadd.f32 1.0, %v1554_v53  ;;  %v604_v7 = vsub.f32 0.0, %v2004_v8  ;;  %v2019_v44 = vadd.f32 %v1829_v25, %v496_v16 }
 0x115   : > { %v1558_v39 = vpop.eup %1557  ;;  %1583 = vrcp.f32 %v716_v3  ;;  %v719_v40 = vadd.f32 1.0, %v1556_v29  ;;  %v624_v11 = vsub.f32 0.0, %v2007_v14  ;;  %v2023_v46 = vadd.f32 %v1829_v25, %v576_v36 }
 0x116   : > { %v1560_v56 = vpop.eup %1559  ;;  %1585 = vrcp.f32 %v736_v19  ;;  %v739_v57 = vadd.f32 1.0, %v1558_v39  ;;  %v664_v63 = vmul.f32 1.442695, %v606_v30  ;;  %v607_v50 = vsub.f32 0.0, %v2011_v20 }
 0x117   : > { %v1562_v43 = vpop.eup %1561  ;;  %1587 = vrcp.f32 %v719_v40  ;;  %v717_v32 = vadd.f32 1.0, %v1560_v56  ;;  %v704_v53 = vmul.f32 1.442695, %v626_v41  ;;  %v627_v3 = vsub.f32 0.0, %v2015_v34 }
 0x118   : > { %v1564_v62 = vpop.eup %1563  ;;  %1589 = vrcp.f32 %v739_v57  ;;  %v737_v35 = vadd.f32 1.0, %v1562_v43  ;;  %v660_v29 = vmul.f32 1.442695, %v604_v7  ;;  %v605_v19 = vsub.f32 0.0, %v2019_v44 }
 0x119   : > { %v1566_v51 = vpop.eup %1565  ;;  %1591 = vrcp.f32 %v717_v32  ;;  %v722_v6 = vadd.f32 1.0, %v1564_v62  ;;  %v700_v25 = vmul.f32 1.442695, %v624_v11  ;;  %v625_v40 = vsub.f32 0.0, %v2023_v46 }
 0x11a   : > { %v1568_v9 = vpop.eup %1567  ;;  %1593 = vrcp.f32 %v737_v35  ;;  %v742_v10 = vadd.f32 1.0, %v1566_v51  ;;  %v666_v57 = vmul.f32 1.442695, %v607_v50  ;;  %v706_v43 = vmul.f32 1.442695, %v627_v3 }
 0x11b   : > { %v1570_v22 = vpop.eup %1569  ;;  %1595 = vrcp.f32 %v722_v6  ;;  %v720_v26 = vadd.f32 1.0, %v1568_v9  ;;  %v662_v35 = vmul.f32 1.442695, %v605_v19 }
 0x11c   : > { %v1572_v28 = vpop.eup %1571  ;;  %1597 = vrcp.f32 %v742_v10  ;;  %v740_v38 = vadd.f32 1.0, %v1570_v22  ;;  %v702_v10 = vmul.f32 1.442695, %v625_v40 }
 0x11d   : > { %v1574_v42 = vpop.eup %1573  ;;  %1599 = vrcp.f32 %v720_v26  ;;  %v723_v55 = vadd.f32 1.0, %v1572_v28 }
 0x11e   : > { %v1576_v45 = vpop.eup %1575  ;;  %1601 = vrcp.f32 %v740_v38  ;;  %v743_v59 = vadd.f32 1.0, %v1574_v42 }
 0x11f   : > { %v1578_v48 = vpop.eup %1577  ;;  %1603 = vrcp.f32 %v723_v55  ;;  %v721_v49 = vadd.f32 1.0, %v1576_v45 }
 0x120   : > { %v1580_v15 = vpop.eup %1579  ;;  %1605 = vrcp.f32 %v743_v59  ;;  %v741_v27 = vadd.f32 1.0, %v1578_v48 }
 0x121   : > { %v1582_v54 = vpop.eup %1581  ;;  %1607 = vrcp.f32 %v721_v49  ;;  %v798_v47 = vmul.f32 %v1580_v15, %v1896_v31 }
 0x122   : > { %v1584_v39 = vpop.eup %1583  ;;  %1609 = vrcp.f32 %v741_v27  ;;  %v818_v6 = vmul.f32 %v1582_v54, %v1899_v37 }
 0x123   : > { %v1586_v56 = vpop.eup %1585  ;;  %1611 = vpow2.f32 %v664_v63  ;;  %v796_v22 = vmul.f32 %v1584_v39, %v1903_v52 }
 0x124   : > { %v1588_v58 = vpop.eup %1587  ;;  %1613 = vpow2.f32 %v704_v53 }
 0x125   : > { %v1590_v32 = vpop.eup %1589  ;;  %v799_v62 = vmul.f32 %v1588_v58, %v1915_v13  ;;  %1615 = vpow2.f32 %v660_v29  ;;  %v816_v13 = vmul.f32 %v1586_v56, %v1907_v1 }
 0x126   : > { %v1592_v51 = vpop.eup %1591  ;;  %v819_v9 = vmul.f32 %v1590_v32, %v1918_v17  ;;  %1617 = vpow2.f32 %v700_v25 }
 0x127   : > { %v1594_v16 = vpop.eup %1593  ;;  %v1263_v26 = vpack.c.bf16 %v799_v62, %v798_v47  ;;  %v797_v30 = vmul.f32 %v1592_v51, %v1921_v18  ;;  %1619 = vpow2.f32 %v666_v57 }
 0x128   : > { %v1596_v31 = vpop.eup %1595  ;;  %v1313_v36 = vpack.c.bf16 %v819_v9, %v818_v6  ;;  %v817_v37 = vmul.f32 %v1594_v16, %v1924_v23  ;;  %1621 = vpow2.f32 %v706_v43 }
 0x129   : > { %v1598_v17 = vpop.eup %1597  ;;  %1339 = vst [vmem:[%s1977_s8 + $0x28] sm:$0xff] %v1263_v26   ;;  %v1258_v28 = vpack.c.bf16 %v797_v30, %v796_v22  ;;  %1623 = vpow2.f32 %v662_v35  ;;  %v802_v1 = vmul.f32 %v1596_v31, %v1927_v24 }
 0x12a   : > { %v1600_v38 = vpop.eup %1599  ;;  %1349 = vst [vmem:[%s1977_s8 + $0x78] sm:$0xff] %v1313_v36   ;;  %v1308_v52 = vpack.c.bf16 %v817_v37, %v816_v13  ;;  %1625 = vpow2.f32 %v702_v10  ;;  %v822_v7 = vmul.f32 %v1598_v17, %v1931_v33 }
 0x12b   : > { %v1602_v41 = vpop.eup %1601  ;;  %1338 = vst [vmem:[%s1977_s8 + $0x20] sm:$0xff] %v1258_v28   ;;  %v800_v11 = vmul.f32 %v1600_v38, %v1941_v60 }
 0x12c   : > { %v1604_v18 = vpop.eup %1603  ;;  %1348 = vst [vmem:[%s1977_s8 + $0x70] sm:$0xff] %v1308_v52   ;;  %v820_v50 = vmul.f32 %v1602_v41, %v1944_v2 }
 0x12d   : > { %v1606_v42 = vpop.eup %1605  ;;  %v803_v55 = vmul.f32 %v1604_v18, %v1947_v4 }
 0x12e   : > { %v1608_v23 = vpop.eup %1607  ;;  %v823_v45 = vmul.f32 %v1606_v42, %v1954_v21 }
 0x12f   : > { %v1610_v59 = vpop.eup %1609  ;;  %v1273_v48 = vpack.c.bf16 %v803_v55, %v802_v1  ;;  %v801_v49 = vmul.f32 %v1608_v23, %v1965_v5 }
 0x130   : > { %v1612_v63 = vpop.eup %1611  ;;  %v1323_v24 = vpack.c.bf16 %v823_v45, %v822_v7  ;;  %v821_v4 = vmul.f32 %v1610_v59, %v1970_v12 }
 0x131   : > { %v1614_v15 = vpop.eup %1613  ;;  %1341 = vst [vmem:[%s1977_s8 + $0x38] sm:$0xff] %v1273_v48   ;;  %v1268_v27 = vpack.c.bf16 %v801_v49, %v800_v11  ;;  %v726_v33 = vadd.f32 1.0, %v1612_v63 }
 0x132   : > { %v1616_v53 = vpop.eup %1615  ;;  %1351 = vst [vmem:[%s1977_s8 + $0x88] sm:$0xff] %v1323_v24   ;;  %v1318_v21 = vpack.c.bf16 %v821_v4, %v820_v50  ;;  %v746_v3 = vadd.f32 1.0, %v1614_v15 }
 0x133   : > { %v1618_v60 = vpop.eup %1617  ;;  %1340 = vst [vmem:[%s1977_s8 + $0x30] sm:$0xff] %v1268_v27   ;;  %1627 = vrcp.f32 %v726_v33  ;;  %v724_v54 = vadd.f32 1.0, %v1616_v53 }
 0x134   : > { %v1620_v5 = vpop.eup %1619  ;;  %1350 = vst [vmem:[%s1977_s8 + $0x80] sm:$0xff] %v1318_v21   ;;  %1629 = vrcp.f32 %v746_v3  ;;  %v744_v2 = vadd.f32 1.0, %v1618_v60 }
 0x135   : > { %v1622_v29 = vpop.eup %1621  ;;  %1631 = vrcp.f32 %v724_v54  ;;  %v727_v19 = vadd.f32 1.0, %v1620_v5 }
 0x136   : > { %v1624_v12 = vpop.eup %1623  ;;  %1633 = vrcp.f32 %v744_v2  ;;  %v747_v39 = vadd.f32 1.0, %v1622_v29 }
 0x137   : > { %v1626_v25 = vpop.eup %1625  ;;  %1635 = vrcp.f32 %v727_v19  ;;  %v725_v40 = vadd.f32 1.0, %v1624_v12 }
 0x138   : > { %1637 = vrcp.f32 %v747_v39  ;;  %v745_v56 = vadd.f32 1.0, %v1626_v25 }
 0x139   : > { %1639 = vrcp.f32 %v725_v40 }
 0x13a   : > { %1641 = vrcp.f32 %v745_v56 }
 0x140   : > { %v1628_v57 = vpop.eup %1627 }
 0x141   : > { %v1630_v58 = vpop.eup %1629  ;;  %v806_v35 = vmul.f32 %v1628_v57, %v1998_v61 }
 0x142   : > { %v1632_v43 = vpop.eup %1631  ;;  %v826_v9 = vmul.f32 %v1630_v58, %v2001_v0 }
 0x143   : > { %v1634_v32 = vpop.eup %1633  ;;  %v804_v22 = vmul.f32 %v1632_v43, %v2004_v8 }
 0x144   : > { %v1636_v47 = vpop.eup %1635 }
 0x145   : > { %v1638_v62 = vpop.eup %1637  ;;  %v807_v51 = vmul.f32 %v1636_v47, %v2011_v20  ;;  %v824_v20 = vmul.f32 %v1634_v32, %v2007_v14 }
 0x146   : > { %v1640_v6 = vpop.eup %1639  ;;  %v827_v10 = vmul.f32 %v1638_v62, %v2015_v34 }
 0x147   : > { %v1642_v16 = vpop.eup %1641  ;;  %v1283_v26 = vpack.c.bf16 %v807_v51, %v806_v35  ;;  %v805_v61 = vmul.f32 %v1640_v6, %v2019_v44 }
 0x148   : > { %v1333_v30 = vpack.c.bf16 %v827_v10, %v826_v9  ;;  %v825_v31 = vmul.f32 %v1642_v16, %v2023_v46 }
 0x149   : > { %1343 = vst [vmem:[%s1977_s8 + $0x48] sm:$0xff] %v1283_v26   ;;  %v1278_v0 = vpack.c.bf16 %v805_v61, %v804_v22 }
 0x14a   : > { %1353 = vst [vmem:[%s1977_s8 + $0x98] sm:$0xff] %v1333_v30   ;;  %v1328_v8 = vpack.c.bf16 %v825_v31, %v824_v20 }
 0x14b   : > { %1342 = vst [vmem:[%s1977_s8 + $0x40] sm:$0xff] %v1278_v0  }
 0x14c   : > { %1352 = vst [vmem:[%s1977_s8 + $0x90] sm:$0xff] %v1328_v8  }
 0x14d   : > { %1656 = shalt.err (!%p1653_p3)
}
 0x14e   : > { %s1657_s27 = scalar_lea.hbm %s2067_s17, 2560  ;;  %s1661_s30 = scalar_lea.hbm %s2119_s3, 5120 }
 0x14f   : > { %p1658_p4 = scmp.ne.s32.totalorder %s2067_s17, %s1657_s27  ;;  %p1662_p9 = scmp.lt.s32.totalorder %s2067_s17, %s2119_s3 }
 0x150   : > { %p1663_p10 = scmp.lt.s32.totalorder %s1661_s30, %s1657_s27 }
 0x151   : > { %p1659_p7 = pnand %p1658_p4, %p1767_p5 }
 0x152   : > { %p1664_p11 = por %p1663_p10, %p1662_p9 }
 0x153   : > { %p1660_p8 = pneg %p1659_p7 }
 0x155   : > { %p1665_p12 = pnand %p1664_p11, %p1660_p8 }
 0x157   : > { %1668 = shalt.err (!%p1665_p12)
}
 0x158   : > { %s1707_s6 = smov 64   ;;  %s1708_s7 = smov 4  }
 0x159   : > { %1420 = dma.vmem_to_hbm [thread:$0]  (%p1767_p5), %s2069_s10, 2560, %s2067_s17, %s2076_s19, %s1707_s6, %s1707_s6, %s1708_s7  }
 0x15a PF: > { %p1426_p13 = scmp.ge.s32.totalorder %s1703_s15, 2  ;;  %s1057_s8 = sand.u32 1, %s1691_s12  }
 0x15b   : > { %s1058_s9 = scalar_lea.sflag [#allocation3], %s1057_s8 }
 0x15c   : > { %p1423_p0 = pnand %p1426_p13, %p1771_p6 }
 0x15e   : > { %p1424_p1 = pneg %p1423_p0 }
 0x160   : > { %1686 = dma.done.wait (%p1424_p1), %s1058_s9, 2560  }
 0x161   : > { %1688 = vsyncadd (%p1424_p1), %s1058_s9, 4294964736  ;;  %p13_p2 = scmp.ge.s32.totalorder %s1754_s18, 4   ;;  %s2122_s12 = smov %s1695_s13 }
 0x162   : > { %s2123_s13 = smov %s1699_s14  ;;  %s2124_s14 = smov %s1765_s21 }
 0x163   : > { %s2125_s15 = smov %s1754_s18  ;;  %15 = sbr.rel (!%p13_p2) target bundleno = 3 (0x3), region = 67 }
 0x168   :  { %1063 = vsyncpa [#allocation3], 1 }
 0x169   :  { %1065 = vsyncpa [#allocation3 + $0x1], 1 }

</bundles_post_ra>
